<compile_context>
chip_gen: v7x
topology: tpu7x:2x2x1
jax: 0.10.0
libtpu: 0.0.40
codegen_flags: <defaults>
</compile_context>

<pallas_src>
import functools

import jax
import jax.numpy as jnp
from jax.experimental import pallas as pl
from jax.experimental.pallas import tpu as pltpu


def actor_fwd_kernel(
    x_ref,        # (S, TB)   state slab (batch on lanes)
    w1_ref,       # (H, S)
    w2_ref,       # (H, H)
    w3_ref,       # (H, H)
    wm_ref,       # (A, H)
    ws_ref,       # (A, H)
    b1_ref,       # (H, 1)
    b2_ref,       # (H, 1)
    b3_ref,       # (H, 1)
    bm_ref,       # (A, 1)
    bs_ref,       # (A, 1)
    mean_ref,     # (A, TB)
    std_ref,      # (A, TB)
    *,
    log_std_min: float,
    log_std_max: float,
):
    cdt = w1_ref.dtype  # compute dtype for MXU operands (bf16 or f32)

    x = x_ref[...]
    # Trunk: 3x (Linear + ReLU), activations stay (H, TB) = full-lane vregs.
    a = jnp.maximum(
        jnp.dot(w1_ref[...], x, preferred_element_type=jnp.float32)
        + b1_ref[...], 0.0)
    a = jnp.maximum(
        jnp.dot(w2_ref[...], a.astype(cdt), preferred_element_type=jnp.float32)
        + b2_ref[...], 0.0)
    a = jnp.maximum(
        jnp.dot(w3_ref[...], a.astype(cdt), preferred_element_type=jnp.float32)
        + b3_ref[...], 0.0)
    a = a.astype(cdt)

    # Heads: mean and std, each a lane-dense (A, TB) store.
    mean_ref[...] = (
        jnp.dot(wm_ref[...], a, preferred_element_type=jnp.float32) + bm_ref[...])
    log_std = (
        jnp.dot(ws_ref[...], a, preferred_element_type=jnp.float32) + bs_ref[...])
    std_ref[...] = jnp.exp(jnp.clip(log_std, log_std_min, log_std_max))


def _pick_batch_tile(batch, max_tile=4096):
    """Return (tile, padded_batch): tile is a multiple of 128, capped, and
    chosen so the grid has >=2 steps when the batch allows (v7x megacore)."""
    b_pad = ((batch + 127) // 128) * 128
    tb = min(max_tile, b_pad)
    if b_pad >= 256 and tb > b_pad // 2:
        tb = max(128, ((b_pad // 2) // 128) * 128)
    b_pad = ((b_pad + tb - 1) // tb) * tb
    return tb, b_pad


def prepare_actor_params(p, use_bf16=True):
    """Reshape/cast raw params for the kernel.

    Expects PyTorch-style layout: weights (out_features, in_features),
    biases (out_features,).  Weights optionally cast to bf16 (MXU-native on
    v6e/v7x); biases stay f32 (added to the f32 accumulator)."""
    wdt = jnp.bfloat16 if use_bf16 else jnp.float32
    out = {}
    for name in ("w1", "w2", "w3", "wm", "ws"):
        out[name] = p[name].astype(wdt)
    for name in ("b1", "b2", "b3", "bm", "bs"):
        out[name] = p[name].reshape(-1, 1).astype(jnp.float32)
    return out


def actor_forward(state, prepared, *, log_std_min=-20.0, log_std_max=2.0,
                  max_tile=4096):
    """Pallas equivalent of Actor.forward: returns (mean, std)."""
    B, S = state.shape
    H = prepared["w1"].shape[0]
    A = prepared["wm"].shape[0]
    cdt = prepared["w1"].dtype

    TB, B_pad = _pick_batch_tile(B, max_tile)
    grid = (B_pad // TB,)

    # Batch-on-lanes slab, padded to the grid extent.
    x_t = state.T.astype(cdt)                      # (S, B)
    if B_pad != B:
        x_t = jnp.pad(x_t, ((0, 0), (0, B_pad - B)))

    kernel = functools.partial(
        actor_fwd_kernel, log_std_min=log_std_min, log_std_max=log_std_max)

    itemsize = jnp.dtype(cdt).itemsize
    param_bytes = sum(int(prepared[k].size) * jnp.dtype(prepared[k].dtype).itemsize
                      for k in prepared)
    flops = 2 * B_pad * (S * H + 2 * H * H + 2 * H * A)
    bytes_accessed = B_pad * S * itemsize + param_bytes + 2 * B_pad * A * 4

    resident = lambda i: (0, 0)   # weights/biases: same block every step -> no re-DMA

    mean_t, std_t = pl.pallas_call(
        kernel,
        out_shape=(jax.ShapeDtypeStruct((A, B_pad), jnp.float32),
                   jax.ShapeDtypeStruct((A, B_pad), jnp.float32)),
        grid=grid,
        in_specs=[
            pl.BlockSpec((S, TB), lambda i: (0, i)),   # state: batch-tiled on lanes
            pl.BlockSpec((H, S), resident),            # w1
            pl.BlockSpec((H, H), resident),            # w2
            pl.BlockSpec((H, H), resident),            # w3
            pl.BlockSpec((A, H), resident),            # w_mean
            pl.BlockSpec((A, H), resident),            # w_log_std
            pl.BlockSpec((H, 1), resident),            # b1
            pl.BlockSpec((H, 1), resident),            # b2
            pl.BlockSpec((H, 1), resident),            # b3
            pl.BlockSpec((A, 1), resident),            # b_mean
            pl.BlockSpec((A, 1), resident),            # b_log_std
        ],
        out_specs=(pl.BlockSpec((A, TB), lambda i: (0, i)),
                   pl.BlockSpec((A, TB), lambda i: (0, i))),
        compiler_params=pltpu.CompilerParams(
            dimension_semantics=("parallel",)),        # 2 TCs on v7x
        cost_estimate=pl.CostEstimate(
            flops=flops, transcendentals=B_pad * A,
            bytes_accessed=bytes_accessed),
    )(x_t,
      prepared["w1"], prepared["w2"], prepared["w3"],
      prepared["wm"], prepared["ws"],
      prepared["b1"], prepared["b2"], prepared["b3"],
      prepared["bm"], prepared["bs"])

    mean = mean_t[:, :B].T
    std = std_t[:, :B].T
    return mean, std


def init_actor_params(key, state_dim, action_dim, hidden_dim):
    """Deterministic synthetic init, PyTorch nn.Linear layout & bounds."""
    ks = jax.random.split(key, 10)

    def linear(kw, kb, fan_in, fan_out):
        bound = 1.0 / jnp.sqrt(fan_in)
        w = jax.random.uniform(kw, (fan_out, fan_in), jnp.float32, -bound, bound)
        b = jax.random.uniform(kb, (fan_out,), jnp.float32, -bound, bound)
        return w, b

    w1, b1 = linear(ks[0], ks[1], state_dim, hidden_dim)
    w2, b2 = linear(ks[2], ks[3], hidden_dim, hidden_dim)
    w3, b3 = linear(ks[4], ks[5], hidden_dim, hidden_dim)
    wm, bm = linear(ks[6], ks[7], hidden_dim, action_dim)
    ws, bs = linear(ks[8], ks[9], hidden_dim, action_dim)
    return dict(w1=w1, b1=b1, w2=w2, b2=b2, w3=w3, b3=b3,
                wm=wm, bm=bm, ws=ws, bs=bs)


def actor_forward_ref(state, p, log_std_min=-20.0, log_std_max=2.0):
    """Plain-JAX f32 reference (PyTorch-layout params)."""
    a = jnp.maximum(state @ p["w1"].T + p["b1"], 0.0)
    a = jnp.maximum(a @ p["w2"].T + p["b2"], 0.0)
    a = jnp.maximum(a @ p["w3"].T + p["b3"], 0.0)
    mean = a @ p["wm"].T + p["bm"]
    std = jnp.exp(jnp.clip(a @ p["ws"].T + p["bs"], log_std_min, log_std_max))
    return mean, std


if __name__ == "__main__":
    # Small shapes consistent with Actor: state_dim=16, hidden_dim=32, action_dim=8.
    batch, state_dim, hidden_dim, action_dim = 2, 16, 32, 8

    key = jax.random.PRNGKey(0)
    k_params, k_state, k_state2 = jax.random.split(key, 3)

    params = init_actor_params(k_params, state_dim, action_dim, hidden_dim)
    state = jax.random.normal(k_state, (batch, state_dim), jnp.float32)
    mean_ref, std_ref = actor_forward_ref(state, params)

    # f32 MXU-operand path: tight check.
    prepared_f32 = prepare_actor_params(params, use_bf16=False)
    mean, std = actor_forward(state, prepared_f32,
                              log_std_min=-20.0, log_std_max=2.0)
    jax.block_until_ready((mean, std))
    assert mean.shape == (batch, action_dim) and std.shape == (batch, action_dim)
    assert jnp.allclose(mean, mean_ref, atol=1e-5, rtol=1e-5)
    assert jnp.allclose(std, std_ref, atol=1e-5, rtol=1e-5)

    # bf16 MXU-operand path (default, v6e/v7x-native): relaxed tolerance.
    prepared_bf16 = prepare_actor_params(params, use_bf16=True)
    mean_b, std_b = actor_forward(state, prepared_bf16)
    jax.block_until_ready((mean_b, std_b))
    assert jnp.allclose(mean_b, mean_ref, atol=3e-2, rtol=3e-2)
    assert jnp.allclose(std_b, std_ref, atol=3e-2, rtol=3e-2)

    # Non-multiple-of-128 batch exercises the pad + multi-step parallel grid.
    state2 = jax.random.normal(k_state2, (300, state_dim), jnp.float32)
    mean2, std2 = actor_forward(state2, prepared_f32)
    jax.block_until_ready((mean2, std2))
    mean2_ref, std2_ref = actor_forward_ref(state2, params)
    assert mean2.shape == (300, action_dim) and std2.shape == (300, action_dim)
    assert jnp.allclose(mean2, mean2_ref, atol=1e-5, rtol=1e-5)
    assert jnp.allclose(std2, std2_ref, atol=1e-5, rtol=1e-5)

    print("KERNEL_OK")
</pallas_src>

<mosaic_0001>
module attributes {stable_mosaic.version = 11 : i64} {
  func.func @actor_fwd_kernel(%arg0: i32, %arg1: memref<16x128xf32, #tpu.memory_space<vmem>>, %arg2: memref<32x16xf32, #tpu.memory_space<vmem>>, %arg3: memref<32x32xf32, #tpu.memory_space<vmem>>, %arg4: memref<32x32xf32, #tpu.memory_space<vmem>>, %arg5: memref<8x32xf32, #tpu.memory_space<vmem>>, %arg6: memref<8x32xf32, #tpu.memory_space<vmem>>, %arg7: memref<32x1xf32, #tpu.memory_space<vmem>>, %arg8: memref<32x1xf32, #tpu.memory_space<vmem>>, %arg9: memref<32x1xf32, #tpu.memory_space<vmem>>, %arg10: memref<8x1xf32, #tpu.memory_space<vmem>>, %arg11: memref<8x1xf32, #tpu.memory_space<vmem>>, %arg12: memref<8x128xf32, #tpu.memory_space<vmem>>, %arg13: memref<8x128xf32, #tpu.memory_space<vmem>>) attributes {dimension_semantics = [#tpu.dimension_semantics<parallel>], iteration_bounds = array<i64: 1>, scalar_prefetch = 0 : i64, scratch_operands = 0 : i64, tpu.core_type = #tpu.core_type<tc>, window_params = [{transform_indices = @transform_0, window_bounds = array<i64: 16, 128>}, {pipeline_mode = #tpu.pipeline_mode<synchronous>, transform_indices = @transform_1, window_bounds = array<i64: 32, 16>}, {pipeline_mode = #tpu.pipeline_mode<synchronous>, transform_indices = @transform_2, window_bounds = array<i64: 32, 32>}, {pipeline_mode = #tpu.pipeline_mode<synchronous>, transform_indices = @transform_3, window_bounds = array<i64: 32, 32>}, {pipeline_mode = #tpu.pipeline_mode<synchronous>, transform_indices = @transform_4, window_bounds = array<i64: 8, 32>}, {pipeline_mode = #tpu.pipeline_mode<synchronous>, transform_indices = @transform_5, window_bounds = array<i64: 8, 32>}, {pipeline_mode = #tpu.pipeline_mode<synchronous>, transform_indices = @transform_6, window_bounds = array<i64: 32, 1>}, {pipeline_mode = #tpu.pipeline_mode<synchronous>, transform_indices = @transform_7, window_bounds = array<i64: 32, 1>}, {pipeline_mode = #tpu.pipeline_mode<synchronous>, transform_indices = @transform_8, window_bounds = array<i64: 32, 1>}, {pipeline_mode = #tpu.pipeline_mode<synchronous>, transform_indices = @transform_9, window_bounds = array<i64: 8, 1>}, {pipeline_mode = #tpu.pipeline_mode<synchronous>, transform_indices = @transform_10, window_bounds = array<i64: 8, 1>}, {transform_indices = @transform_11, window_bounds = array<i64: 8, 128>}, {transform_indices = @transform_12, window_bounds = array<i64: 8, 128>}]} {
    %c0 = arith.constant 0 : index
    %c0_0 = arith.constant 0 : index
    %0 = vector.load %arg1[%c0, %c0_0] : memref<16x128xf32, #tpu.memory_space<vmem>>, vector<16x128xf32>
    %c0_1 = arith.constant 0 : index
    %c0_2 = arith.constant 0 : index
    %1 = vector.load %arg2[%c0_1, %c0_2] : memref<32x16xf32, #tpu.memory_space<vmem>>, vector<32x16xf32>
    %cst = arith.constant dense<0.000000e+00> : vector<32x128xf32>
    %2 = tpu.matmul %1, %0, %cst {dimension_numbers = #tpu.dot_dimension_numbers<[1], [0], [0], [1], [0, 0, 1, 1], [], []>} : vector<32x16xf32>, vector<16x128xf32>, vector<32x128xf32> -> vector<32x128xf32>
    %c0_3 = arith.constant 0 : index
    %c0_4 = arith.constant 0 : index
    %3 = vector.load %arg7[%c0_3, %c0_4] : memref<32x1xf32, #tpu.memory_space<vmem>>, vector<32x1xf32>
    %4 = vector.broadcast %3 : vector<32x1xf32> to vector<32x128xf32>
    %5 = arith.addf %2, %4 : vector<32x128xf32>
    %cst_5 = arith.constant 0.000000e+00 : f32
    %6 = vector.broadcast %cst_5 : f32 to vector<32x128xf32>
    %7 = arith.maximumf %5, %6 : vector<32x128xf32>
    %c0_6 = arith.constant 0 : index
    %c0_7 = arith.constant 0 : index
    %8 = vector.load %arg3[%c0_6, %c0_7] : memref<32x32xf32, #tpu.memory_space<vmem>>, vector<32x32xf32>
    %cst_8 = arith.constant dense<0.000000e+00> : vector<32x128xf32>
    %9 = tpu.matmul %8, %7, %cst_8 {dimension_numbers = #tpu.dot_dimension_numbers<[1], [0], [0], [1], [0, 0, 1, 1], [], []>} : vector<32x32xf32>, vector<32x128xf32>, vector<32x128xf32> -> vector<32x128xf32>
    %c0_9 = arith.constant 0 : index
    %c0_10 = arith.constant 0 : index
    %10 = vector.load %arg8[%c0_9, %c0_10] : memref<32x1xf32, #tpu.memory_space<vmem>>, vector<32x1xf32>
    %11 = vector.broadcast %10 : vector<32x1xf32> to vector<32x128xf32>
    %12 = arith.addf %9, %11 : vector<32x128xf32>
    %cst_11 = arith.constant 0.000000e+00 : f32
    %13 = vector.broadcast %cst_11 : f32 to vector<32x128xf32>
    %14 = arith.maximumf %12, %13 : vector<32x128xf32>
    %c0_12 = arith.constant 0 : index
    %c0_13 = arith.constant 0 : index
    %15 = vector.load %arg4[%c0_12, %c0_13] : memref<32x32xf32, #tpu.memory_space<vmem>>, vector<32x32xf32>
    %cst_14 = arith.constant dense<0.000000e+00> : vector<32x128xf32>
    %16 = tpu.matmul %15, %14, %cst_14 {dimension_numbers = #tpu.dot_dimension_numbers<[1], [0], [0], [1], [0, 0, 1, 1], [], []>} : vector<32x32xf32>, vector<32x128xf32>, vector<32x128xf32> -> vector<32x128xf32>
    %c0_15 = arith.constant 0 : index
    %c0_16 = arith.constant 0 : index
    %17 = vector.load %arg9[%c0_15, %c0_16] : memref<32x1xf32, #tpu.memory_space<vmem>>, vector<32x1xf32>
    %18 = vector.broadcast %17 : vector<32x1xf32> to vector<32x128xf32>
    %19 = arith.addf %16, %18 : vector<32x128xf32>
    %cst_17 = arith.constant 0.000000e+00 : f32
    %20 = vector.broadcast %cst_17 : f32 to vector<32x128xf32>
    %21 = arith.maximumf %19, %20 : vector<32x128xf32>
    %c0_18 = arith.constant 0 : index
    %c0_19 = arith.constant 0 : index
    %22 = vector.load %arg5[%c0_18, %c0_19] : memref<8x32xf32, #tpu.memory_space<vmem>>, vector<8x32xf32>
    %cst_20 = arith.constant dense<0.000000e+00> : vector<8x128xf32>
    %23 = tpu.matmul %22, %21, %cst_20 {dimension_numbers = #tpu.dot_dimension_numbers<[1], [0], [0], [1], [0, 0, 1, 1], [], []>} : vector<8x32xf32>, vector<32x128xf32>, vector<8x128xf32> -> vector<8x128xf32>
    %c0_21 = arith.constant 0 : index
    %c0_22 = arith.constant 0 : index
    %24 = vector.load %arg10[%c0_21, %c0_22] : memref<8x1xf32, #tpu.memory_space<vmem>>, vector<8x1xf32>
    %25 = vector.broadcast %24 : vector<8x1xf32> to vector<8x128xf32>
    %26 = arith.addf %23, %25 : vector<8x128xf32>
    %c0_23 = arith.constant 0 : index
    %c0_24 = arith.constant 0 : index
    %27 = vector.load %arg12[%c0_23, %c0_24] : memref<8x128xf32, #tpu.memory_space<vmem>>, vector<8x128xf32>
    tpu.vector_store %arg12[%c0_23, %c0_24], %26 {strides = array<i32>} : memref<8x128xf32, #tpu.memory_space<vmem>>, vector<8x128xf32>,
    %c0_25 = arith.constant 0 : index
    %c0_26 = arith.constant 0 : index
    %28 = vector.load %arg6[%c0_25, %c0_26] : memref<8x32xf32, #tpu.memory_space<vmem>>, vector<8x32xf32>
    %cst_27 = arith.constant dense<0.000000e+00> : vector<8x128xf32>
    %29 = tpu.matmul %28, %21, %cst_27 {dimension_numbers = #tpu.dot_dimension_numbers<[1], [0], [0], [1], [0, 0, 1, 1], [], []>} : vector<8x32xf32>, vector<32x128xf32>, vector<8x128xf32> -> vector<8x128xf32>
    %c0_28 = arith.constant 0 : index
    %c0_29 = arith.constant 0 : index
    %30 = vector.load %arg11[%c0_28, %c0_29] : memref<8x1xf32, #tpu.memory_space<vmem>>, vector<8x1xf32>
    %31 = vector.broadcast %30 : vector<8x1xf32> to vector<8x128xf32>
    %32 = arith.addf %29, %31 : vector<8x128xf32>
    %cst_30 = arith.constant -2.000000e+01 : f32
    %cst_31 = arith.constant 2.000000e+00 : f32
    %33 = vector.broadcast %cst_30 : f32 to vector<8x128xf32>
    %34 = arith.maximumf %33, %32 : vector<8x128xf32>
    %35 = vector.broadcast %cst_31 : f32 to vector<8x128xf32>
    %36 = arith.minimumf %35, %34 : vector<8x128xf32>
    %37 = math.exp %36 : vector<8x128xf32>
    %c0_32 = arith.constant 0 : index
    %c0_33 = arith.constant 0 : index
    %38 = vector.load %arg13[%c0_32, %c0_33] : memref<8x128xf32, #tpu.memory_space<vmem>>, vector<8x128xf32>
    tpu.vector_store %arg13[%c0_32, %c0_33], %37 {strides = array<i32>} : memref<8x128xf32, #tpu.memory_space<vmem>>, vector<8x128xf32>,
    return
  }
  func.func @transform_0(%arg0: i32) -> (i32, i32) {
    %c0_i32 = arith.constant 0 : i32
    %c0_i32_0 = arith.constant 0 : i32
    return %c0_i32, %arg0 : i32, i32
  }
  func.func @transform_1(%arg0: i32) -> (i32, i32) {
    %c0_i32 = arith.constant 0 : i32
    %c0_i32_0 = arith.constant 0 : i32
    %c0_i32_1 = arith.constant 0 : i32
    return %c0_i32, %c0_i32_0 : i32, i32
  }
  func.func @transform_2(%arg0: i32) -> (i32, i32) {
    %c0_i32 = arith.constant 0 : i32
    %c0_i32_0 = arith.constant 0 : i32
    %c0_i32_1 = arith.constant 0 : i32
    return %c0_i32, %c0_i32_0 : i32, i32
  }
  func.func @transform_3(%arg0: i32) -> (i32, i32) {
    %c0_i32 = arith.constant 0 : i32
    %c0_i32_0 = arith.constant 0 : i32
    %c0_i32_1 = arith.constant 0 : i32
    return %c0_i32, %c0_i32_0 : i32, i32
  }
  func.func @transform_4(%arg0: i32) -> (i32, i32) {
    %c0_i32 = arith.constant 0 : i32
    %c0_i32_0 = arith.constant 0 : i32
    %c0_i32_1 = arith.constant 0 : i32
    return %c0_i32, %c0_i32_0 : i32, i32
  }
  func.func @transform_5(%arg0: i32) -> (i32, i32) {
    %c0_i32 = arith.constant 0 : i32
    %c0_i32_0 = arith.constant 0 : i32
    %c0_i32_1 = arith.constant 0 : i32
    return %c0_i32, %c0_i32_0 : i32, i32
  }
  func.func @transform_6(%arg0: i32) -> (i32, i32) {
    %c0_i32 = arith.constant 0 : i32
    %c0_i32_0 = arith.constant 0 : i32
    %c0_i32_1 = arith.constant 0 : i32
    return %c0_i32, %c0_i32_0 : i32, i32
  }
  func.func @transform_7(%arg0: i32) -> (i32, i32) {
    %c0_i32 = arith.constant 0 : i32
    %c0_i32_0 = arith.constant 0 : i32
    %c0_i32_1 = arith.constant 0 : i32
    return %c0_i32, %c0_i32_0 : i32, i32
  }
  func.func @transform_8(%arg0: i32) -> (i32, i32) {
    %c0_i32 = arith.constant 0 : i32
    %c0_i32_0 = arith.constant 0 : i32
    %c0_i32_1 = arith.constant 0 : i32
    return %c0_i32, %c0_i32_0 : i32, i32
  }
  func.func @transform_9(%arg0: i32) -> (i32, i32) {
    %c0_i32 = arith.constant 0 : i32
    %c0_i32_0 = arith.constant 0 : i32
    %c0_i32_1 = arith.constant 0 : i32
    return %c0_i32, %c0_i32_0 : i32, i32
  }
  func.func @transform_10(%arg0: i32) -> (i32, i32) {
    %c0_i32 = arith.constant 0 : i32
    %c0_i32_0 = arith.constant 0 : i32
    %c0_i32_1 = arith.constant 0 : i32
    return %c0_i32, %c0_i32_0 : i32, i32
  }
  func.func @transform_11(%arg0: i32) -> (i32, i32) {
    %c0_i32 = arith.constant 0 : i32
    %c0_i32_0 = arith.constant 0 : i32
    return %c0_i32, %arg0 : i32, i32
  }
  func.func @transform_12(%arg0: i32) -> (i32, i32) {
    %c0_i32 = arith.constant 0 : i32
    %c0_i32_0 = arith.constant 0 : i32
    return %c0_i32, %arg0 : i32, i32
  }
}

</mosaic_0001>

<bundles_post_ra>
// kernel: tpu_custom_call.1
= control target key start
LH: loop header
LB: loop body
LE: loop exit
PB: predicated region body
PF: predicated region fallthrough
CT: control target
= control target key end

     0   :  { %18 = vsyncpa [#allocation3], 0  ;;  %vm72_vm0 = vcmask 130048   ;;  %v823_v4 = vmov 0   ;;  %s1022_s0 = inlined_call_operand.vmem [shape: f32[16,128], index: 0, kind: input, shape index: {}]   ;;  %s1023_s1 = inlined_call_operand.vmem [shape: f32[32,16], index: 1, kind: input, shape index: {}]   ;;  %s1024_s2 = inlined_call_operand.vmem [shape: f32[32,32], index: 2, kind: input, shape index: {}]   ;;  %s1025_s3 = inlined_call_operand.vmem [shape: f32[32,32], index: 3, kind: input, shape index: {}]   ;;  %s1026_s4 = inlined_call_operand.vmem [shape: f32[8,32], index: 4, kind: input, shape index: {}]   ;;  %s1027_s5 = inlined_call_operand.vmem [shape: f32[8,32], index: 5, kind: input, shape index: {}]   ;;  %s1028_s6 = inlined_call_operand.vmem [shape: f32[32,1], index: 6, kind: input, shape index: {}]   ;;  %s1029_s7 = inlined_call_operand.vmem [shape: f32[32,1], index: 7, kind: input, shape index: {}]   ;;  %s1030_s8 = inlined_call_operand.vmem [shape: f32[32,1], index: 8, kind: input, shape index: {}]   ;;  %s1031_s9 = inlined_call_operand.vmem [shape: f32[8,1], index: 9, kind: input, shape index: {}]   ;;  %s1032_s10 = inlined_call_operand.vmem [shape: f32[8,1], index: 10, kind: input, shape index: {}]   ;;  %s1033_s11 = inlined_call_operand.hbm [shape: f32[8,128], index: 11, kind: output, shape index: {0}]   ;;  %s1034_s12 = inlined_call_operand.hbm [shape: f32[8,128], index: 12, kind: output, shape index: {1}]  }
   0x1   :  { %v42_v0 = vld [vmem:[%s1022_s0] sm:$0xff]  ;;  %v43_v1 = vld [vmem:[%s1022_s0 + $0x8] sm:$0xff]  ;;  %771 = vset.pattern.permute.xlu0 %v823_v4  ;;  %772 = vset.pattern.permute.xlu1 %v823_v4  ;;  %v50_v6 = vld [vmem:[%s1028_s6 + $0x10] sm:$0xff] }
   0x2   :  { %v44_v2 = vld [vmem:[%s1023_s1] sm:$0xff]  ;;  %v733_v3 = vpack.c.bf16 %v43_v1, %v42_v0  ;;  %v45_v7 = vld [vmem:[%s1023_s1 + $0x8] sm:$0xff]  ;;  %64 = vperm.xlu1 %772, %v50_v6   ;;  %v46_v9 = vld [vmem:[%s1023_s1 + $0x10] sm:$0xff] }
   0x3   :  { %677 = vmatprep.mubr.msk.f32.mxu0 %vm72_vm0, %v44_v2  ;;  %v48_v5 = vld [vmem:[%s1028_s6] sm:$0xff]  ;;  %v49_v8 = vld [vmem:[%s1028_s6 + $0x8] sm:$0xff]  ;;  %v51_v10 = vld [vmem:[%s1028_s6 + $0x18] sm:$0xff] }
   0x4   :  { %734 = vmatprep.subr.bf16.mxu0 %v733_v3  ;;  %54 = vperm.xlu0 %771, %v48_v5  }
   0x5   :  { %736 = vmatpush3.bf16.msra.mxu0 %v733_v3 }
   0x6   :  { %19 = vsyncpa [#allocation5], 0  ;;  %v47_v11 = vld [vmem:[%s1023_s1 + $0x18] sm:$0xff]  ;;  %69 = vperm.xlu1 %772, %v51_v10   ;;  %v178_v12 = vld [vmem:[%s1029_s7] sm:$0xff]  ;;  %vm202_vm1 = vcmask 261120   ;;  %v824_v2 = vmov 0.0|0.0  }
   0x7   :  { %v179_v13 = vld [vmem:[%s1029_s7 + $0x8] sm:$0xff]  ;;  %v180_v14 = vld [vmem:[%s1029_s7 + $0x10] sm:$0xff]  ;;  %v181_v15 = vld [vmem:[%s1029_s7 + $0x18] sm:$0xff]  ;;  %vm825_vm2 = vmmov 0   ;;  %v826_v3 = vmov 0.0   ;;  %s827_s14 = smov [#allocation2]  }
   0x8   :  { %678 = vmatmul.mubr.msk.f32.vlgmr.msra.gmra.mrb[0].mxu0 %vm72_vm0, %v45_v7  ;;  %59 = vperm.xlu0 %771, %v49_v8   ;;  %v308_v16 = vld [vmem:[%s1030_s8] sm:$0xff]  ;;  %v309_v17 = vld [vmem:[%s1030_s8 + $0x8] sm:$0xff]  ;;  %v310_v18 = vld [vmem:[%s1030_s8 + $0x10] sm:$0xff]  ;;  %s605_s15 = sshll.u32 %s827_s14, 4  ;;  %s606_s15 = int_to_ptr.vmem [resolvable:$true] %s605_s15 }
   0x9   :  { %680 = vmatprep.mubr.msk.f32.mxu0 %vm72_vm0, %v46_v9  ;;  %v311_v19 = vld [vmem:[%s1030_s8 + $0x18] sm:$0xff]  ;;  %v515_v20 = vld [vmem:[%s1032_s10] sm:$0xff]  ;;  %v175_v41 = vld [vmem:[%s1024_s2 + $0x8] sm:$0xff]  ;;  %p780_p1 = scmp.lt.s32.totalorder %s606_s15, %s606_s15 }
   0xa   :  { %189 = vperm.xlu1 %772, %v179_v13   ;;  %v434_v21 = vld [vmem:[%s1031_s9] sm:$0xff]  ;;  %v176_v42 = vld [vmem:[%s1024_s2 + $0x10] sm:$0xff]  ;;  %v177_v43 = vld [vmem:[%s1024_s2 + $0x18] sm:$0xff] }
   0xb   :  { %v174_v22 = vld [vmem:[%s1024_s2] sm:$0xff]  ;;  %v305_v63 = vld [vmem:[%s1025_s3 + $0x8] sm:$0xff]  ;;  %v306_v0 = vld [vmem:[%s1025_s3 + $0x10] sm:$0xff] }
   0xc   :  { %681 = vmatmul.mubr.msk.f32.gmra.mrb[2].mxu0 %vm72_vm0, %v47_v11  ;;  %184 = vperm.xlu0 %771, %v178_v12   ;;  %v304_v44 = vld [vmem:[%s1025_s3] sm:$0xff]  ;;  %v307_v1 = vld [vmem:[%s1025_s3 + $0x18] sm:$0xff] }
   0xd   :  { %691 = vmatprep.mubr.msk.f32.mxu1 %vm202_vm1, %v174_v22  ;;  %705 = vmatprep.mubr.msk.f32.mxu0 %vm202_vm1, %v304_v44  ;;  %v433_v22 = vld [vmem:[%s1026_s4] sm:$0xff]  ;;  %s775_s4 = scalar_lea.vmem %s606_s15, 128 }
   0xe   :  { %199 = vperm.xlu1 %772, %v181_v15   ;;  %p776_p0 = scmp.ne.s32.totalorder %s606_s15, %s775_s4  ;;  %p781_p2 = scmp.lt.s32.totalorder %s775_s4, %s775_s4 }
  0x10   :  { %194 = vperm.xlu0 %771, %v180_v14   ;;  %p782_p3 = por %p781_p2, %p780_p1 }
  0x12   :  { %319 = vperm.xlu1 %772, %v309_v17   ;;  %p783_p4 = pnand %p782_p3, %p776_p0 }
  0x14   :  { %314 = vperm.xlu0 %771, %v308_v16  }
  0x16   :  { %329 = vperm.xlu1 %772, %v311_v19  }
  0x18   :  { %324 = vperm.xlu0 %771, %v310_v18  }
  0x1a   :  { %437 = vperm.xlu1 %772, %v434_v21  }
  0x1c   :  { %518 = vperm.xlu0 %771, %v515_v20  }
  0x81   :  { %v65_v24 = vpop.permute.xlu1 %64 }
  0x83   :  { %v55_v23 = vpop.permute.xlu0 %54 }
  0x85   :  { %v70_v31 = vpop.permute.xlu1 %69 }
  0x87   :  { %v60_v25 = vpop.permute.xlu0 %59 }
  0x89   :  { %v190_v45 = vpop.permute.xlu1 %189 }
  0x8b   :  { %v185_v46 = vpop.permute.xlu0 %184 }
  0x8d   :  { %v200_v52 = vpop.permute.xlu1 %199 }
  0x8f   :  { %v195_v55 = vpop.permute.xlu0 %194 }
  0x91   :  { %v320_v4 = vpop.permute.xlu1 %319 }
  0x93   :  { %v315_v5 = vpop.permute.xlu0 %314 }
  0x95   :  { %v330_v11 = vpop.permute.xlu1 %329 }
  0x97   :  { %v325_v14 = vpop.permute.xlu0 %324 }
  0xdb   :  { %v679_v26 = vpop.f32.mrb[0].mxu0 }
  0xdc   :  { %v157_v27 = vadd.f32 %v679_v26, %v60_v25  ;;  %v151_v28 = vpop.f32.mrb[1].mxu0  ;;  %v438_v25 = vpop.permute.xlu1 %437 }
  0xdd   :  { %v152_v29 = vadd.f32 %v151_v28, %v55_v23  ;;  %v514_v23 = vld [vmem:[%s1027_s5] sm:$0xff] }
  0xde   :  { %v171_v30 = vmax.f32 %v157_v27, 0.0 }
  0xdf   :  { %v170_v32 = vmax.f32 %v152_v29, 0.0  ;;  %v682_v33 = vpop.f32.mrb[2].mxu0 }
  0xe0   :  { %v167_v34 = vadd.f32 %v682_v33, %v70_v31  ;;  %v161_v35 = vpop.f32.mrb[3].mxu0 }
  0xe1   :  { %v162_v36 = vadd.f32 %v161_v35, %v65_v24  ;;  %v737_v37 = vpack.c.bf16 %v171_v30, %v170_v32  ;;  %v519_v24 = vpop.permute.xlu0 %518 }
  0xe2   :  { %v173_v38 = vmax.f32 %v167_v34, 0.0 }
  0xe3   :  { %v172_v39 = vmax.f32 %v162_v36, 0.0  ;;  %738 = vmatprep.subr.bf16.mxu1 %v737_v37 }
  0xe4   :  { %740 = vmatpush3.bf16.msra.mxu1 %v737_v37 }
  0xe5   :  { %v741_v40 = vpack.c.bf16 %v173_v38, %v172_v39 }
  0xe7   :  { %742 = vmatprep.subr.bf16.mxu1 %v741_v40 }
  0xe8   :  { %744 = vmatpush3.bf16.msra.mxu1 %v741_v40 }
  0xe9   :  { %753 = vmatprep.subr.bf16.mxu1 %v824_v2 }
  0xeb   :  { %692 = vmatmul.mubr.msk.f32.vlgmr.msra.gmra.mrb[0].mxu1 %vm202_vm1, %v175_v41 }
  0xec   :  { %694 = vmatprep.mubr.msk.f32.mxu1 %vm202_vm1, %v176_v42 }
  0xef   :  { %695 = vmatmul.mubr.msk.f32.gmra.mrb[2].mxu1 %vm202_vm1, %v177_v43 }
  0xf0   :  { %719 = vmatprep.mubr.msk.f32.mxu1 %vm825_vm2, %v826_v3 }
 0x1be   :  { %v693_v47 = vpop.f32.mrb[0].mxu1 }
 0x1bf   :  { %v287_v48 = vadd.f32 %v693_v47, %v190_v45  ;;  %v281_v49 = vpop.f32.mrb[1].mxu1 }
 0x1c0   :  { %v282_v50 = vadd.f32 %v281_v49, %v185_v46 }
 0x1c1   :  { %v301_v51 = vmax.f32 %v287_v48, 0.0 }
 0x1c2   :  { %v300_v53 = vmax.f32 %v282_v50, 0.0  ;;  %v696_v54 = vpop.f32.mrb[2].mxu1 }
 0x1c3   :  { %v297_v56 = vadd.f32 %v696_v54, %v200_v52  ;;  %v291_v57 = vpop.f32.mrb[3].mxu1 }
 0x1c4   :  { %v745_v58 = vpack.c.bf16 %v301_v51, %v300_v53  ;;  %v292_v59 = vadd.f32 %v291_v57, %v195_v55 }
 0x1c5   :  { %v303_v60 = vmax.f32 %v297_v56, 0.0 }
 0x1c6   :  { %v302_v61 = vmax.f32 %v292_v59, 0.0  ;;  %746 = vmatprep.subr.bf16.mxu0 %v745_v58 }
 0x1c7   :  { %748 = vmatpush3.bf16.msra.mxu0 %v745_v58 }
 0x1c8   :  { %v749_v62 = vpack.c.bf16 %v303_v60, %v302_v61 }
 0x1ca   :  { %750 = vmatprep.subr.bf16.mxu0 %v749_v62 }
 0x1cb   :  { %752 = vmatpush3.bf16.msra.mxu0 %v749_v62 }
 0x1cc   :  { %759 = vmatprep.subr.bf16.mxu0 %v824_v2 }
 0x1ce   :  { %706 = vmatmul.mubr.msk.f32.vlgmr.msra.gmra.mrb[4].mxu0 %vm202_vm1, %v305_v63 }
 0x1cf   :  { %708 = vmatprep.mubr.msk.f32.mxu0 %vm202_vm1, %v306_v0 }
 0x1d2   :  { %709 = vmatmul.mubr.msk.f32.gmra.mrb[6].mxu0 %vm202_vm1, %v307_v1 }
 0x1d3   :  { %730 = vmatprep.mubr.msk.f32.mxu0 %vm825_vm2, %v826_v3 }
 0x2a1   :  { %v707_v6 = vpop.f32.mrb[4].mxu0 }
 0x2a2   :  { %v416_v7 = vadd.f32 %v707_v6, %v320_v4  ;;  %v410_v8 = vpop.f32.mrb[5].mxu0 }
 0x2a3   :  { %v411_v9 = vadd.f32 %v410_v8, %v315_v5 }
 0x2a4   :  { %v430_v10 = vmax.f32 %v416_v7, 0.0 }
 0x2a5   :  { %v429_v12 = vmax.f32 %v411_v9, 0.0  ;;  %v710_v13 = vpop.f32.mrb[6].mxu0 }
 0x2a6   :  { %v426_v15 = vadd.f32 %v710_v13, %v330_v11  ;;  %v420_v16 = vpop.f32.mrb[7].mxu0 }
 0x2a7   :  { %v754_v17 = vpack.c.bf16 %v430_v10, %v429_v12  ;;  %v421_v18 = vadd.f32 %v420_v16, %v325_v14 }
 0x2a8   :  { %v432_v19 = vmax.f32 %v426_v15, 0.0 }
 0x2a9   :  { %v431_v20 = vmax.f32 %v421_v18, 0.0  ;;  %755 = vmatpush3.bf16.msra.mxu1 %v754_v17  ;;  %761 = vmatpush3.bf16.msra.mxu0 %v754_v17 }
 0x2aa   :  { %756 = vmatprep.subr.bf16.mxu1 %v824_v2  ;;  %762 = vmatprep.subr.bf16.mxu0 %v824_v2 }
 0x2ab   :  { %v757_v21 = vpack.c.bf16 %v432_v19, %v431_v20 }
 0x2ad   :  { %758 = vmatpush3.bf16.msra.mxu1 %v757_v21  ;;  %764 = vmatpush3.bf16.msra.mxu0 %v757_v21 }
 0x2b0   :  { %720 = vmatmul.mubr.msk.f32.vlgmr.msra.gmra.mrb[4].mxu1 %vm202_vm1, %v433_v22  ;;  %731 = vmatmul.mubr.msk.f32.vlgmr.msra.gmra.mrb[8].mxu0 %vm202_vm1, %v514_v23 }
 0x383   :  { %v509_v26 = vpop.f32.mrb[4].mxu1  ;;  %v590_v27 = vpop.f32.mrb[8].mxu0 }
 0x384   :  { %v510_v28 = vadd.f32 %v509_v26, %v438_v25  ;;  %v591_v29 = vadd.f32 %v590_v27, %v519_v24  ;;  %v732_v30 = vpop.f32.mrb[9].mxu0  ;;  %v721_v31 = vpop.f32.mrb[5].mxu1 }
 0x386   :  { %513 = vst [vmem:[#allocation2] sm:$0xff] %v510_v28  ;;  %v594_v32 = vmax.f32 %v591_v29, -20.0 }
 0x387   :  { %786 = shalt.err (!%p783_p4)
}
 0x388   :  { %s787_s7 = scalar_lea.hbm %s1033_s11, 128 }
 0x389   :  { %p788_p5 = scmp.ne.s32.totalorder %s1033_s11, %s787_s7  ;;  %p791_p6 = scmp.lt.u32.totalorder %s787_s7, %s1033_s11 }
 0x38b   :  { %p793_p7 = pnand %p791_p6, %p788_p5 }
 0x38d   :  { %796 = shalt.err (!%p793_p7)
}
 0x38e   :  { %608 = dma.vmem_to_hbm [thread:$0]  %s606_s15, 128, %s1033_s11, [#allocation3]   ;;  %v595_v33 = vmin.f32 %v594_v32, 2.0 }
 0x38f   :  { %s828_s9 = smov [#allocation4]  }
 0x390   :  { %v596_v34 = vmul.f32 1.442695, %v595_v33  ;;  %s615_s10 = sshll.u32 %s828_s9, 4  ;;  %s616_s10 = int_to_ptr.vmem [resolvable:$true] %s615_s10 }
 0x391   :  { %s797_s22 = scalar_lea.vmem %s616_s10, 128  ;;  %p802_p9 = scmp.lt.s32.totalorder %s616_s10, %s616_s10 }
 0x392   :  { %773 = vpow2.f32 %v596_v34  ;;  %p798_p8 = scmp.ne.s32.totalorder %s616_s10, %s797_s22  ;;  %p803_p10 = scmp.lt.s32.totalorder %s797_s22, %s797_s22 }
 0x394   :  { %p804_p11 = por %p803_p10, %p802_p9 }
 0x396   :  { %p805_p12 = pnand %p804_p11, %p798_p8 }
 0x39c   :  { %v774_v35 = vpop.eup %773 }
 0x39d   :  { %598 = vst [vmem:[#allocation4] sm:$0xff] %v774_v35 }
 0x39e   :  { %808 = shalt.err (!%p805_p12)
}
 0x39f   :  { %s809_s25 = scalar_lea.hbm %s1034_s12, 128 }
 0x3a0   :  { %p810_p13 = scmp.ne.s32.totalorder %s1034_s12, %s809_s25  ;;  %p813_p0 = scmp.lt.u32.totalorder %s809_s25, %s1034_s12 }
 0x3a2   :  { %p815_p1 = pnand %p813_p0, %p810_p13 }
 0x3a4   :  { %818 = shalt.err (!%p815_p1)
}
 0x3a5   :  { %618 = dma.vmem_to_hbm [thread:$0]  %s616_s10, 128, %s1034_s12, [#allocation5]  }
 0x3a6   :  { %819 = dma.done.wait [#allocation3], 128  }
 0x3a7   :  { %820 = vsyncadd [#allocation3], 4294967168 }
 0x3a8   :  { %821 = dma.done.wait [#allocation5], 128  }
 0x3a9   :  { %822 = vsyncadd [#allocation5], 4294967168 }
 0x3aa   :  { %625 = vsyncpa [#allocation3], 1 }
 0x3ab   :  { %626 = vsyncpa [#allocation5], 1 }

</bundles_post_ra>
